<compile_context>
chip_gen: v6e
topology: v6e:2x2x1
jax: 0.10.0
libtpu: 0.0.40
codegen_flags: <defaults>
</compile_context>

<pallas_src>
import functools

import jax
import jax.numpy as jnp
import numpy as np
from jax.experimental import pallas as pl
from jax.experimental.pallas import tpu as pltpu


def mab_kernel(q_ref, k_ref,
               wq_ref, bq_ref, wkv_ref, bkv_ref, wo_ref, bo_ref,
               o_ref,
               *, num_heads, dim_V, block_b, Nq, Nk):
    # q_ref: (block_b*Nq, dim_Q), k_ref: (block_b*Nk, dim_K)
    q = q_ref[...]
    kin = k_ref[...]

    # Input projections.  Weights are already (in, out); fc_k/fc_v are fused.
    Qp = jnp.dot(q, wq_ref[...], preferred_element_type=jnp.float32) + bq_ref[...]
    KV = jnp.dot(kin, wkv_ref[...], preferred_element_type=jnp.float32) + bkv_ref[...]
    Kp = KV[:, :dim_V]          # (block_b*Nk, dim_V)
    Vp = KV[:, dim_V:]          # (block_b*Nk, dim_V)

    ds = dim_V // num_heads
    scale = jnp.float32(1.0 / np.sqrt(dim_V))

    # Per-head attention.  3-D single-batch einsums only (Mosaic-supported);
    # per-head results stay in registers and are concatenated along lanes —
    # no VMEM scratch, no masked per-head stores.
    pv = []
    for h in range(num_heads):
        qh = Qp[:, h * ds:(h + 1) * ds].reshape(block_b, Nq, ds)
        kh = Kp[:, h * ds:(h + 1) * ds].reshape(block_b, Nk, ds)
        vh = Vp[:, h * ds:(h + 1) * ds].reshape(block_b, Nk, ds)

        s = jnp.einsum('bqd,bkd->bqk', qh, kh,
                       preferred_element_type=jnp.float32) * scale  # (b, Nq, Nk)
        s = s - jnp.max(s, axis=-1, keepdims=True)
        e = jnp.exp(s)
        # Exact reciprocal keeps the 1e-5 agreement with the f32 reference.
        a = e * pl.reciprocal(jnp.sum(e, axis=-1, keepdims=True))
        pv_h = jnp.einsum('bqk,bkd->bqd', a, vh,
                          preferred_element_type=jnp.float32)        # (b, Nq, ds)
        pv.append(pv_h.reshape(block_b * Nq, ds))

    # Residual with the projected queries, added once at full width.
    O = Qp + jnp.concatenate(pv, axis=-1)                            # (rows, dim_V)

    # O = O + relu(fc_o(O)), straight from registers.
    ff = jnp.dot(O, wo_ref[...], preferred_element_type=jnp.float32) + bo_ref[...]
    o_ref[...] = (O + jnp.maximum(ff, 0.0)).astype(o_ref.dtype)


def _num_tensorcores():
    """Best-effort count of TensorCores a single Pallas grid shards across."""
    try:
        kind = jax.devices()[0].device_kind.lower()
    except Exception:
        return 1
    if any(tag in kind for tag in ("v4", "v5p", "v7", "tpu7")):
        return 2        # megacore / dual-TC parts
    return 1            # v2/v3/v5e/v6e: single TensorCore per Pallas grid


def _vmem_estimate_bytes(block_b, Nq, Nk, dim_Q, dim_K, dim_V, num_heads):
    """Rough per-grid-step VMEM footprint (f32, double-buffered I/O)."""
    f = 4
    io = 2 * f * block_b * (Nq * dim_Q + Nk * dim_K)            # inputs x2 buffers
    out = 2 * f * block_b * Nq * dim_V                           # output x2 buffers
    w = 2 * f * (dim_Q * dim_V + dim_K * 2 * dim_V + dim_V * dim_V + 4 * dim_V)
    inter = f * block_b * (3 * Nq * dim_V + 2 * Nk * dim_V
                           + num_heads * Nq * Nk + Nq * dim_V)   # Qp/KV/O/ff/scores
    return io + out + w + 2 * inter                              # 2x headroom


def _pick_block_b(B, Nq, Nk, dim_Q, dim_K, dim_V, num_heads, num_tc,
                  vmem_budget_bytes=12 << 20):
    """Largest batch block that fits the VMEM budget; keep the grid a multiple
    of the TensorCore count on dual-TC chips and prefer 8-row alignment."""
    divisors = [d for d in range(1, B + 1) if B % d == 0]
    fitting = [d for d in divisors
               if _vmem_estimate_bytes(d, Nq, Nk, dim_Q, dim_K, dim_V,
                                       num_heads) <= vmem_budget_bytes]
    cands = fitting if fitting else [min(divisors)]

    def pref(bb):
        grid = B // bb
        tc_ok = (num_tc == 1) or (grid % num_tc == 0)
        aligned = (bb * Nq) % 8 == 0 and (bb * Nk) % 8 == 0
        return (tc_ok, aligned, bb)

    return max(cands, key=pref)


def mab_forward(Q, K, params, num_heads, vmem_budget_bytes=12 << 20):
    B, Nq, dim_Q = Q.shape
    _, Nk, dim_K = K.shape
    dim_V = params["wq"].shape[0]
    assert dim_V % num_heads == 0, "dim_V must be divisible by num_heads"

    num_tc = _num_tensorcores()
    block_b = _pick_block_b(B, Nq, Nk, dim_Q, dim_K, dim_V, num_heads, num_tc,
                            vmem_budget_bytes)
    grid_b = B // block_b

    # Wrapper-side layout plumbing (free w.r.t. the kernel):
    #   * flatten batch into the row dim so projections see big row slabs,
    #   * pre-transpose weights to (in, out),
    #   * fuse fc_k / fc_v weights and biases.
    Qf = Q.reshape(B * Nq, dim_Q)
    Kf = K.reshape(B * Nk, dim_K)
    wq_t = params["wq"].T                                                # (dim_Q, dim_V)
    wkv_t = jnp.concatenate([params["wk"].T, params["wv"].T], axis=1)    # (dim_K, 2*dim_V)
    bkv = jnp.concatenate([params["bk"], params["bv"]], axis=1)          # (1, 2*dim_V)
    wo_t = params["wo"].T                                                # (dim_V, dim_V)

    kernel = functools.partial(mab_kernel, num_heads=num_heads, dim_V=dim_V,
                               block_b=block_b, Nq=Nq, Nk=Nk)

    def invariant_spec(shape):
        # Grid-invariant operand (constant index_map): never refetched after
        # the first grid step.
        return pl.BlockSpec(shape, lambda b: (0,) * len(shape))

    out_flat = pl.pallas_call(
        kernel,
        out_shape=jax.ShapeDtypeStruct((B * Nq, dim_V), Q.dtype),
        grid_spec=pltpu.PrefetchScalarGridSpec(
            num_scalar_prefetch=0,
            grid=(grid_b,),
            in_specs=[
                pl.BlockSpec((block_b * Nq, dim_Q), lambda b: (b, 0)),
                pl.BlockSpec((block_b * Nk, dim_K), lambda b: (b, 0)),
                invariant_spec((dim_Q, dim_V)), invariant_spec((1, dim_V)),        # fc_q
                invariant_spec((dim_K, 2 * dim_V)), invariant_spec((1, 2 * dim_V)),  # fc_k+fc_v
                invariant_spec((dim_V, dim_V)), invariant_spec((1, dim_V)),         # fc_o
            ],
            out_specs=pl.BlockSpec((block_b * Nq, dim_V), lambda b: (b, 0)),
        ),
        compiler_params=pltpu.CompilerParams(
            dimension_semantics=("parallel",)),
    )(Qf, Kf,
      wq_t, params["bq"],
      wkv_t, bkv,
      wo_t, params["bo"])

    return out_flat.reshape(B, Nq, dim_V)


def mab_reference(Q, K, p, num_heads):
    """Pure-JAX mirror of the PyTorch forward, for verification."""
    dim_V = p["wq"].shape[0]
    Qp = Q @ p["wq"].T + p["bq"]
    Kp = K @ p["wk"].T + p["bk"]
    Vp = K @ p["wv"].T + p["bv"]
    Q_ = jnp.concatenate(jnp.split(Qp, num_heads, axis=2), axis=0)
    K_ = jnp.concatenate(jnp.split(Kp, num_heads, axis=2), axis=0)
    V_ = jnp.concatenate(jnp.split(Vp, num_heads, axis=2), axis=0)
    A = jax.nn.softmax(
        jnp.einsum('bqd,bkd->bqk', Q_, K_) / np.sqrt(dim_V), axis=2)
    O = jnp.concatenate(
        jnp.split(Q_ + jnp.einsum('bqk,bkd->bqd', A, V_), num_heads, axis=0),
        axis=2)
    return O + jax.nn.relu(O @ p["wo"].T + p["bo"])


def init_linear(key, out_f, in_f):
    """Deterministic nn.Linear-style init: U(-1/sqrt(in_f), 1/sqrt(in_f))."""
    kw, kb = jax.random.split(key)
    bound = 1.0 / np.sqrt(in_f)
    w = jax.random.uniform(kw, (out_f, in_f), jnp.float32, -bound, bound)
    b = jax.random.uniform(kb, (1, out_f), jnp.float32, -bound, bound)
    return w, b


if __name__ == "__main__":
    B, Nq, Nk = 2, 8, 8
    dim_Q, dim_K, dim_V, num_heads = 16, 16, 32, 4

    key = jax.random.PRNGKey(0)
    kq, kk, kwq, kwk, kwv, kwo = jax.random.split(key, 6)

    Q = jax.random.normal(kq, (B, Nq, dim_Q), jnp.float32)
    K = jax.random.normal(kk, (B, Nk, dim_K), jnp.float32)

    wq, bq = init_linear(kwq, dim_V, dim_Q)
    wk, bk = init_linear(kwk, dim_V, dim_K)
    wv, bv = init_linear(kwv, dim_V, dim_K)
    wo, bo = init_linear(kwo, dim_V, dim_V)
    params = dict(wq=wq, bq=bq, wk=wk, bk=bk, wv=wv, bv=bv, wo=wo, bo=bo)

    out = mab_forward(Q, K, params, num_heads)
    out = jax.block_until_ready(out)

    ref = jax.block_until_ready(mab_reference(Q, K, params, num_heads))
    assert out.shape == (B, Nq, dim_V)
    np.testing.assert_allclose(np.asarray(out), np.asarray(ref),
                               rtol=1e-5, atol=1e-5)

    print("KERNEL_OK")
</pallas_src>

<mosaic_0001>
module attributes {stable_mosaic.version = 11 : i64} {
  func.func @mab_kernel(%arg0: i32, %arg1: memref<16x16xf32, #tpu.memory_space<vmem>>, %arg2: memref<16x16xf32, #tpu.memory_space<vmem>>, %arg3: memref<16x32xf32, #tpu.memory_space<vmem>>, %arg4: memref<1x32xf32, #tpu.memory_space<vmem>>, %arg5: memref<16x64xf32, #tpu.memory_space<vmem>>, %arg6: memref<1x64xf32, #tpu.memory_space<vmem>>, %arg7: memref<32x32xf32, #tpu.memory_space<vmem>>, %arg8: memref<1x32xf32, #tpu.memory_space<vmem>>, %arg9: memref<16x32xf32, #tpu.memory_space<vmem>>) attributes {dimension_semantics = [#tpu.dimension_semantics<parallel>], iteration_bounds = array<i64: 1>, scalar_prefetch = 0 : i64, scratch_operands = 0 : i64, tpu.core_type = #tpu.core_type<tc>, window_params = [{transform_indices = @transform_0, window_bounds = array<i64: 16, 16>}, {transform_indices = @transform_1, window_bounds = array<i64: 16, 16>}, {pipeline_mode = #tpu.pipeline_mode<synchronous>, transform_indices = @transform_2, window_bounds = array<i64: 16, 32>}, {pipeline_mode = #tpu.pipeline_mode<synchronous>, transform_indices = @transform_3, window_bounds = array<i64: 1, 32>}, {pipeline_mode = #tpu.pipeline_mode<synchronous>, transform_indices = @transform_4, window_bounds = array<i64: 16, 64>}, {pipeline_mode = #tpu.pipeline_mode<synchronous>, transform_indices = @transform_5, window_bounds = array<i64: 1, 64>}, {pipeline_mode = #tpu.pipeline_mode<synchronous>, transform_indices = @transform_6, window_bounds = array<i64: 32, 32>}, {pipeline_mode = #tpu.pipeline_mode<synchronous>, transform_indices = @transform_7, window_bounds = array<i64: 1, 32>}, {transform_indices = @transform_8, window_bounds = array<i64: 16, 32>}]} {
    %c0 = arith.constant 0 : index
    %c0_0 = arith.constant 0 : index
    %0 = vector.load %arg1[%c0, %c0_0] : memref<16x16xf32, #tpu.memory_space<vmem>>, vector<16x16xf32>
    %c0_1 = arith.constant 0 : index
    %c0_2 = arith.constant 0 : index
    %1 = vector.load %arg2[%c0_1, %c0_2] : memref<16x16xf32, #tpu.memory_space<vmem>>, vector<16x16xf32>
    %c0_3 = arith.constant 0 : index
    %c0_4 = arith.constant 0 : index
    %2 = vector.load %arg3[%c0_3, %c0_4] : memref<16x32xf32, #tpu.memory_space<vmem>>, vector<16x32xf32>
    %cst = arith.constant dense<0.000000e+00> : vector<16x32xf32>
    %3 = tpu.matmul %0, %2, %cst {dimension_numbers = #tpu.dot_dimension_numbers<[1], [0], [0], [1], [0, 0, 1, 1], [], []>} : vector<16x16xf32>, vector<16x32xf32>, vector<16x32xf32> -> vector<16x32xf32>
    %c0_5 = arith.constant 0 : index
    %c0_6 = arith.constant 0 : index
    %4 = vector.load %arg4[%c0_5, %c0_6] : memref<1x32xf32, #tpu.memory_space<vmem>>, vector<1x32xf32>
    %5 = vector.broadcast %4 : vector<1x32xf32> to vector<16x32xf32>
    %6 = arith.addf %3, %5 : vector<16x32xf32>
    %c0_7 = arith.constant 0 : index
    %c0_8 = arith.constant 0 : index
    %7 = vector.load %arg5[%c0_7, %c0_8] : memref<16x64xf32, #tpu.memory_space<vmem>>, vector<16x64xf32>
    %cst_9 = arith.constant dense<0.000000e+00> : vector<16x64xf32>
    %8 = tpu.matmul %1, %7, %cst_9 {dimension_numbers = #tpu.dot_dimension_numbers<[1], [0], [0], [1], [0, 0, 1, 1], [], []>} : vector<16x16xf32>, vector<16x64xf32>, vector<16x64xf32> -> vector<16x64xf32>
    %c0_10 = arith.constant 0 : index
    %c0_11 = arith.constant 0 : index
    %9 = vector.load %arg6[%c0_10, %c0_11] : memref<1x64xf32, #tpu.memory_space<vmem>>, vector<1x64xf32>
    %10 = vector.broadcast %9 : vector<1x64xf32> to vector<16x64xf32>
    %11 = arith.addf %8, %10 : vector<16x64xf32>
    %12 = vector.extract_strided_slice %11 {offsets = [0, 0], sizes = [16, 32], strides = [1, 1]} : vector<16x64xf32> to vector<16x32xf32>
    %13 = vector.extract_strided_slice %11 {offsets = [0, 32], sizes = [16, 32], strides = [1, 1]} : vector<16x64xf32> to vector<16x32xf32>
    %14 = vector.extract_strided_slice %6 {offsets = [0, 0], sizes = [16, 8], strides = [1, 1]} : vector<16x32xf32> to vector<16x8xf32>
    %15 = vector.shape_cast %14 : vector<16x8xf32> to vector<2x8x8xf32>
    %16 = vector.extract_strided_slice %12 {offsets = [0, 0], sizes = [16, 8], strides = [1, 1]} : vector<16x32xf32> to vector<16x8xf32>
    %17 = vector.shape_cast %16 : vector<16x8xf32> to vector<2x8x8xf32>
    %18 = vector.extract_strided_slice %13 {offsets = [0, 0], sizes = [16, 8], strides = [1, 1]} : vector<16x32xf32> to vector<16x8xf32>
    %19 = vector.shape_cast %18 : vector<16x8xf32> to vector<2x8x8xf32>
    "tpu.trace_start"() <{level = 10 : i32, message = "bqd,bkd->bqk"}> : () -> ()
    %cst_12 = arith.constant dense<0.000000e+00> : vector<2x8x8xf32>
    %20 = tpu.matmul %15, %17, %cst_12 {dimension_numbers = #tpu.dot_dimension_numbers<[2], [2], [1], [1], [0, 0, 0, 1, 1, 1], [0], [0]>} : vector<2x8x8xf32>, vector<2x8x8xf32>, vector<2x8x8xf32> -> vector<2x8x8xf32>
    "tpu.trace_stop"() : () -> ()
    %cst_13 = arith.constant 0.176776692 : f32
    %21 = vector.broadcast %cst_13 : f32 to vector<2x8x8xf32>
    %22 = arith.mulf %20, %21 : vector<2x8x8xf32>
    %cst_14 = arith.constant dense<0xFF800000> : vector<2x8xf32>
    %23 = vector.multi_reduction <maximumf>, %22, %cst_14 [2] : vector<2x8x8xf32> to vector<2x8xf32>
    %24 = vector.shape_cast %23 : vector<2x8xf32> to vector<2x8x1xf32>
    %25 = vector.broadcast %24 : vector<2x8x1xf32> to vector<2x8x8xf32>
    %26 = arith.subf %22, %25 : vector<2x8x8xf32>
    %27 = math.exp %26 : vector<2x8x8xf32>
    %cst_15 = arith.constant dense<0.000000e+00> : vector<2x8xf32>
    %28 = vector.multi_reduction <add>, %27, %cst_15 [2] : vector<2x8x8xf32> to vector<2x8xf32>
    %29 = vector.shape_cast %28 : vector<2x8xf32> to vector<2x8x1xf32>
    %30 = tpu.reciprocal %29 : vector<2x8x1xf32> -> vector<2x8x1xf32>
    %31 = vector.broadcast %30 : vector<2x8x1xf32> to vector<2x8x8xf32>
    %32 = arith.mulf %27, %31 : vector<2x8x8xf32>
    "tpu.trace_start"() <{level = 10 : i32, message = "bqk,bkd->bqd"}> : () -> ()
    %cst_16 = arith.constant dense<0.000000e+00> : vector<2x8x8xf32>
    %33 = tpu.matmul %32, %19, %cst_16 {dimension_numbers = #tpu.dot_dimension_numbers<[2], [1], [1], [2], [0, 0, 0, 1, 1, 2], [0], [0]>} : vector<2x8x8xf32>, vector<2x8x8xf32>, vector<2x8x8xf32> -> vector<2x8x8xf32>
    "tpu.trace_stop"() : () -> ()
    %34 = vector.shape_cast %33 : vector<2x8x8xf32> to vector<16x8xf32>
    %35 = vector.extract_strided_slice %6 {offsets = [0, 8], sizes = [16, 8], strides = [1, 1]} : vector<16x32xf32> to vector<16x8xf32>
    %36 = vector.shape_cast %35 : vector<16x8xf32> to vector<2x8x8xf32>
    %37 = vector.extract_strided_slice %12 {offsets = [0, 8], sizes = [16, 8], strides = [1, 1]} : vector<16x32xf32> to vector<16x8xf32>
    %38 = vector.shape_cast %37 : vector<16x8xf32> to vector<2x8x8xf32>
    %39 = vector.extract_strided_slice %13 {offsets = [0, 8], sizes = [16, 8], strides = [1, 1]} : vector<16x32xf32> to vector<16x8xf32>
    %40 = vector.shape_cast %39 : vector<16x8xf32> to vector<2x8x8xf32>
    "tpu.trace_start"() <{level = 10 : i32, message = "bqd,bkd->bqk"}> : () -> ()
    %cst_17 = arith.constant dense<0.000000e+00> : vector<2x8x8xf32>
    %41 = tpu.matmul %36, %38, %cst_17 {dimension_numbers = #tpu.dot_dimension_numbers<[2], [2], [1], [1], [0, 0, 0, 1, 1, 1], [0], [0]>} : vector<2x8x8xf32>, vector<2x8x8xf32>, vector<2x8x8xf32> -> vector<2x8x8xf32>
    "tpu.trace_stop"() : () -> ()
    %cst_18 = arith.constant 0.176776692 : f32
    %42 = vector.broadcast %cst_18 : f32 to vector<2x8x8xf32>
    %43 = arith.mulf %41, %42 : vector<2x8x8xf32>
    %cst_19 = arith.constant dense<0xFF800000> : vector<2x8xf32>
    %44 = vector.multi_reduction <maximumf>, %43, %cst_19 [2] : vector<2x8x8xf32> to vector<2x8xf32>
    %45 = vector.shape_cast %44 : vector<2x8xf32> to vector<2x8x1xf32>
    %46 = vector.broadcast %45 : vector<2x8x1xf32> to vector<2x8x8xf32>
    %47 = arith.subf %43, %46 : vector<2x8x8xf32>
    %48 = math.exp %47 : vector<2x8x8xf32>
    %cst_20 = arith.constant dense<0.000000e+00> : vector<2x8xf32>
    %49 = vector.multi_reduction <add>, %48, %cst_20 [2] : vector<2x8x8xf32> to vector<2x8xf32>
    %50 = vector.shape_cast %49 : vector<2x8xf32> to vector<2x8x1xf32>
    %51 = tpu.reciprocal %50 : vector<2x8x1xf32> -> vector<2x8x1xf32>
    %52 = vector.broadcast %51 : vector<2x8x1xf32> to vector<2x8x8xf32>
    %53 = arith.mulf %48, %52 : vector<2x8x8xf32>
    "tpu.trace_start"() <{level = 10 : i32, message = "bqk,bkd->bqd"}> : () -> ()
    %cst_21 = arith.constant dense<0.000000e+00> : vector<2x8x8xf32>
    %54 = tpu.matmul %53, %40, %cst_21 {dimension_numbers = #tpu.dot_dimension_numbers<[2], [1], [1], [2], [0, 0, 0, 1, 1, 2], [0], [0]>} : vector<2x8x8xf32>, vector<2x8x8xf32>, vector<2x8x8xf32> -> vector<2x8x8xf32>
    "tpu.trace_stop"() : () -> ()
    %55 = vector.shape_cast %54 : vector<2x8x8xf32> to vector<16x8xf32>
    %56 = vector.extract_strided_slice %6 {offsets = [0, 16], sizes = [16, 8], strides = [1, 1]} : vector<16x32xf32> to vector<16x8xf32>
    %57 = vector.shape_cast %56 : vector<16x8xf32> to vector<2x8x8xf32>
    %58 = vector.extract_strided_slice %12 {offsets = [0, 16], sizes = [16, 8], strides = [1, 1]} : vector<16x32xf32> to vector<16x8xf32>
    %59 = vector.shape_cast %58 : vector<16x8xf32> to vector<2x8x8xf32>
    %60 = vector.extract_strided_slice %13 {offsets = [0, 16], sizes = [16, 8], strides = [1, 1]} : vector<16x32xf32> to vector<16x8xf32>
    %61 = vector.shape_cast %60 : vector<16x8xf32> to vector<2x8x8xf32>
    "tpu.trace_start"() <{level = 10 : i32, message = "bqd,bkd->bqk"}> : () -> ()
    %cst_22 = arith.constant dense<0.000000e+00> : vector<2x8x8xf32>
    %62 = tpu.matmul %57, %59, %cst_22 {dimension_numbers = #tpu.dot_dimension_numbers<[2], [2], [1], [1], [0, 0, 0, 1, 1, 1], [0], [0]>} : vector<2x8x8xf32>, vector<2x8x8xf32>, vector<2x8x8xf32> -> vector<2x8x8xf32>
    "tpu.trace_stop"() : () -> ()
    %cst_23 = arith.constant 0.176776692 : f32
    %63 = vector.broadcast %cst_23 : f32 to vector<2x8x8xf32>
    %64 = arith.mulf %62, %63 : vector<2x8x8xf32>
    %cst_24 = arith.constant dense<0xFF800000> : vector<2x8xf32>
    %65 = vector.multi_reduction <maximumf>, %64, %cst_24 [2] : vector<2x8x8xf32> to vector<2x8xf32>
    %66 = vector.shape_cast %65 : vector<2x8xf32> to vector<2x8x1xf32>
    %67 = vector.broadcast %66 : vector<2x8x1xf32> to vector<2x8x8xf32>
    %68 = arith.subf %64, %67 : vector<2x8x8xf32>
    %69 = math.exp %68 : vector<2x8x8xf32>
    %cst_25 = arith.constant dense<0.000000e+00> : vector<2x8xf32>
    %70 = vector.multi_reduction <add>, %69, %cst_25 [2] : vector<2x8x8xf32> to vector<2x8xf32>
    %71 = vector.shape_cast %70 : vector<2x8xf32> to vector<2x8x1xf32>
    %72 = tpu.reciprocal %71 : vector<2x8x1xf32> -> vector<2x8x1xf32>
    %73 = vector.broadcast %72 : vector<2x8x1xf32> to vector<2x8x8xf32>
    %74 = arith.mulf %69, %73 : vector<2x8x8xf32>
    "tpu.trace_start"() <{level = 10 : i32, message = "bqk,bkd->bqd"}> : () -> ()
    %cst_26 = arith.constant dense<0.000000e+00> : vector<2x8x8xf32>
    %75 = tpu.matmul %74, %61, %cst_26 {dimension_numbers = #tpu.dot_dimension_numbers<[2], [1], [1], [2], [0, 0, 0, 1, 1, 2], [0], [0]>} : vector<2x8x8xf32>, vector<2x8x8xf32>, vector<2x8x8xf32> -> vector<2x8x8xf32>
    "tpu.trace_stop"() : () -> ()
    %76 = vector.shape_cast %75 : vector<2x8x8xf32> to vector<16x8xf32>
    %77 = vector.extract_strided_slice %6 {offsets = [0, 24], sizes = [16, 8], strides = [1, 1]} : vector<16x32xf32> to vector<16x8xf32>
    %78 = vector.shape_cast %77 : vector<16x8xf32> to vector<2x8x8xf32>
    %79 = vector.extract_strided_slice %12 {offsets = [0, 24], sizes = [16, 8], strides = [1, 1]} : vector<16x32xf32> to vector<16x8xf32>
    %80 = vector.shape_cast %79 : vector<16x8xf32> to vector<2x8x8xf32>
    %81 = vector.extract_strided_slice %13 {offsets = [0, 24], sizes = [16, 8], strides = [1, 1]} : vector<16x32xf32> to vector<16x8xf32>
    %82 = vector.shape_cast %81 : vector<16x8xf32> to vector<2x8x8xf32>
    "tpu.trace_start"() <{level = 10 : i32, message = "bqd,bkd->bqk"}> : () -> ()
    %cst_27 = arith.constant dense<0.000000e+00> : vector<2x8x8xf32>
    %83 = tpu.matmul %78, %80, %cst_27 {dimension_numbers = #tpu.dot_dimension_numbers<[2], [2], [1], [1], [0, 0, 0, 1, 1, 1], [0], [0]>} : vector<2x8x8xf32>, vector<2x8x8xf32>, vector<2x8x8xf32> -> vector<2x8x8xf32>
    "tpu.trace_stop"() : () -> ()
    %cst_28 = arith.constant 0.176776692 : f32
    %84 = vector.broadcast %cst_28 : f32 to vector<2x8x8xf32>
    %85 = arith.mulf %83, %84 : vector<2x8x8xf32>
    %cst_29 = arith.constant dense<0xFF800000> : vector<2x8xf32>
    %86 = vector.multi_reduction <maximumf>, %85, %cst_29 [2] : vector<2x8x8xf32> to vector<2x8xf32>
    %87 = vector.shape_cast %86 : vector<2x8xf32> to vector<2x8x1xf32>
    %88 = vector.broadcast %87 : vector<2x8x1xf32> to vector<2x8x8xf32>
    %89 = arith.subf %85, %88 : vector<2x8x8xf32>
    %90 = math.exp %89 : vector<2x8x8xf32>
    %cst_30 = arith.constant dense<0.000000e+00> : vector<2x8xf32>
    %91 = vector.multi_reduction <add>, %90, %cst_30 [2] : vector<2x8x8xf32> to vector<2x8xf32>
    %92 = vector.shape_cast %91 : vector<2x8xf32> to vector<2x8x1xf32>
    %93 = tpu.reciprocal %92 : vector<2x8x1xf32> -> vector<2x8x1xf32>
    %94 = vector.broadcast %93 : vector<2x8x1xf32> to vector<2x8x8xf32>
    %95 = arith.mulf %90, %94 : vector<2x8x8xf32>
    "tpu.trace_start"() <{level = 10 : i32, message = "bqk,bkd->bqd"}> : () -> ()
    %cst_31 = arith.constant dense<0.000000e+00> : vector<2x8x8xf32>
    %96 = tpu.matmul %95, %82, %cst_31 {dimension_numbers = #tpu.dot_dimension_numbers<[2], [1], [1], [2], [0, 0, 0, 1, 1, 2], [0], [0]>} : vector<2x8x8xf32>, vector<2x8x8xf32>, vector<2x8x8xf32> -> vector<2x8x8xf32>
    "tpu.trace_stop"() : () -> ()
    %97 = vector.shape_cast %96 : vector<2x8x8xf32> to vector<16x8xf32>
    %98 = tpu.concatenate %34, %55, %76, %97 in 1 : vector<16x8xf32>, vector<16x8xf32>, vector<16x8xf32>, vector<16x8xf32> -> vector<16x32xf32>
    %99 = arith.addf %6, %98 : vector<16x32xf32>
    %c0_32 = arith.constant 0 : index
    %c0_33 = arith.constant 0 : index
    %100 = vector.load %arg7[%c0_32, %c0_33] : memref<32x32xf32, #tpu.memory_space<vmem>>, vector<32x32xf32>
    %cst_34 = arith.constant dense<0.000000e+00> : vector<16x32xf32>
    %101 = tpu.matmul %99, %100, %cst_34 {dimension_numbers = #tpu.dot_dimension_numbers<[1], [0], [0], [1], [0, 0, 1, 1], [], []>} : vector<16x32xf32>, vector<32x32xf32>, vector<16x32xf32> -> vector<16x32xf32>
    %c0_35 = arith.constant 0 : index
    %c0_36 = arith.constant 0 : index
    %102 = vector.load %arg8[%c0_35, %c0_36] : memref<1x32xf32, #tpu.memory_space<vmem>>, vector<1x32xf32>
    %103 = vector.broadcast %102 : vector<1x32xf32> to vector<16x32xf32>
    %104 = arith.addf %101, %103 : vector<16x32xf32>
    %cst_37 = arith.constant 0.000000e+00 : f32
    %105 = vector.broadcast %cst_37 : f32 to vector<16x32xf32>
    %106 = arith.maximumf %104, %105 : vector<16x32xf32>
    %107 = arith.addf %99, %106 : vector<16x32xf32>
    %c0_38 = arith.constant 0 : index
    %c0_39 = arith.constant 0 : index
    %108 = vector.load %arg9[%c0_38, %c0_39] : memref<16x32xf32, #tpu.memory_space<vmem>>, vector<16x32xf32>
    tpu.vector_store %arg9[%c0_38, %c0_39], %107 {strides = array<i32>} : memref<16x32xf32, #tpu.memory_space<vmem>>, vector<16x32xf32>,
    return
  }
  func.func @transform_0(%arg0: i32) -> (i32, i32) {
    %c0_i32 = arith.constant 0 : i32
    %c0_i32_0 = arith.constant 0 : i32
    return %arg0, %c0_i32 : i32, i32
  }
  func.func @transform_1(%arg0: i32) -> (i32, i32) {
    %c0_i32 = arith.constant 0 : i32
    %c0_i32_0 = arith.constant 0 : i32
    return %arg0, %c0_i32 : i32, i32
  }
  func.func @transform_2(%arg0: i32) -> (i32, i32) {
    %c0_i32 = arith.constant 0 : i32
    %c0_i32_0 = arith.constant 0 : i32
    %c0_i32_1 = arith.constant 0 : i32
    return %c0_i32, %c0_i32_0 : i32, i32
  }
  func.func @transform_3(%arg0: i32) -> (i32, i32) {
    %c0_i32 = arith.constant 0 : i32
    %c0_i32_0 = arith.constant 0 : i32
    %c0_i32_1 = arith.constant 0 : i32
    return %c0_i32, %c0_i32_0 : i32, i32
  }
  func.func @transform_4(%arg0: i32) -> (i32, i32) {
    %c0_i32 = arith.constant 0 : i32
    %c0_i32_0 = arith.constant 0 : i32
    %c0_i32_1 = arith.constant 0 : i32
    return %c0_i32, %c0_i32_0 : i32, i32
  }
  func.func @transform_5(%arg0: i32) -> (i32, i32) {
    %c0_i32 = arith.constant 0 : i32
    %c0_i32_0 = arith.constant 0 : i32
    %c0_i32_1 = arith.constant 0 : i32
    return %c0_i32, %c0_i32_0 : i32, i32
  }
  func.func @transform_6(%arg0: i32) -> (i32, i32) {
    %c0_i32 = arith.constant 0 : i32
    %c0_i32_0 = arith.constant 0 : i32
    %c0_i32_1 = arith.constant 0 : i32
    return %c0_i32, %c0_i32_0 : i32, i32
  }
  func.func @transform_7(%arg0: i32) -> (i32, i32) {
    %c0_i32 = arith.constant 0 : i32
    %c0_i32_0 = arith.constant 0 : i32
    %c0_i32_1 = arith.constant 0 : i32
    return %c0_i32, %c0_i32_0 : i32, i32
  }
  func.func @transform_8(%arg0: i32) -> (i32, i32) {
    %c0_i32 = arith.constant 0 : i32
    %c0_i32_0 = arith.constant 0 : i32
    return %arg0, %c0_i32 : i32, i32
  }
}

</mosaic_0001>

<bundles_post_ra>
// kernel: tpu_custom_call.1
= control target key start
LH: loop header
LB: loop body
LE: loop exit
PB: predicated region body
PF: predicated region fallthrough
CT: control target
= control target key end

     0   :  { %13 = vsyncpa [#allocation3], 0  ;;  %s2383_s0 = inlined_call_operand.hbm [shape: f32[16,16], index: 0, kind: input, shape index: {}]   ;;  %s2384_s1 = inlined_call_operand.hbm [shape: f32[16,16], index: 1, kind: input, shape index: {}]   ;;  %s2385_s2 = inlined_call_operand.hbm [shape: f32[16,32], index: 2, kind: input, shape index: {}]   ;;  %s2386_s3 = inlined_call_operand.vmem [shape: f32[1,32], index: 3, kind: input, shape index: {}]   ;;  %s2387_s4 = inlined_call_operand.hbm [shape: f32[16,64], index: 4, kind: input, shape index: {}]   ;;  %s2388_s5 = inlined_call_operand.vmem [shape: f32[1,64], index: 5, kind: input, shape index: {}]   ;;  %s2389_s6 = inlined_call_operand.hbm [shape: f32[32,32], index: 6, kind: input, shape index: {}]   ;;  %s2390_s7 = inlined_call_operand.vmem [shape: f32[1,32], index: 7, kind: input, shape index: {}]   ;;  %s2391_s8 = inlined_call_operand.hbm [shape: f32[16,32], index: 8, kind: output, shape index: {}]  }
   0x1   :  { %14 = vsyncpa [#allocation6], 0 }
   0x2   :  { %15 = vsyncpa [#allocation9], 0 }
   0x3   :  { %16 = vsyncpa [#allocation4], 0  ;;  %s2122_s27 = smov [#allocation5]   ;;  %s2123_s29 = smov [#allocation8]  }
   0x4   :  { %s34_s28 = sshll.u32 %s2122_s27, 4  ;;  %s60_s30 = sshll.u32 %s2123_s29, 4  ;;  %s35_s28 = int_to_ptr.vmem [resolvable:$true] %s34_s28  ;;  %s61_s30 = int_to_ptr.vmem [resolvable:$true] %s60_s30 }
   0x5   :  { %s2002_s9 = scalar_lea.vmem %s35_s28, 256  ;;  %p2007_p1 = scmp.lt.s32.totalorder %s35_s28, %s35_s28 }
   0x6   :  { %p2003_p0 = scmp.ne.s32.totalorder %s35_s28, %s2002_s9  ;;  %p2008_p2 = scmp.lt.s32.totalorder %s2002_s9, %s2002_s9 }
   0x8   :  { %p2009_p3 = por %p2008_p2, %p2007_p1 }
   0xa   :  { %p2010_p4 = pnand %p2009_p3, %p2003_p0 }
   0xc   :  { %2013 = shalt.err (!%p2010_p4)
}
   0xd   :  { %s2124_s10 = smov 128   ;;  %s2125_s11 = smov 8  }
   0xe   :  { %40 = dma.hbm_to_vmem [thread:$0]  %s2384_s1, 256, %s35_s28, [#allocation6], %s2124_s10, %s2124_s10, %s2125_s11  }
   0xf   :  { %s2022_s14 = scalar_lea.vmem %s61_s30, 256  ;;  %p2027_p6 = scmp.lt.s32.totalorder %s61_s30, %s61_s30 }
  0x10   :  { %p2023_p5 = scmp.ne.s32.totalorder %s61_s30, %s2022_s14  ;;  %p2028_p7 = scmp.lt.s32.totalorder %s2022_s14, %s2022_s14 }
  0x12   :  { %p2029_p8 = por %p2028_p7, %p2027_p6 }
  0x14   :  { %p2030_p9 = pnand %p2029_p8, %p2023_p5 }
  0x16   :  { %2033 = shalt.err (!%p2030_p9)
}
  0x17   :  { %66 = dma.hbm_to_vmem [thread:$0]  %s2387_s4, 256, %s61_s30, [#allocation9], %s2124_s10, %s2124_s10, %s2125_s11  }
  0x18   :  { %s2126_s17 = smov [#allocation2]   ;;  %s2127_s19 = smov [#allocation7]  }
  0x19   :  { %s22_s18 = sshll.u32 %s2126_s17, 4  ;;  %s46_s20 = sshll.u32 %s2127_s19, 4  ;;  %s23_s18 = int_to_ptr.vmem [resolvable:$true] %s22_s18  ;;  %s47_s20 = int_to_ptr.vmem [resolvable:$true] %s46_s20 }
  0x1a   :  { %s2042_s1 = scalar_lea.vmem %s23_s18, 256  ;;  %p2047_p11 = scmp.lt.s32.totalorder %s23_s18, %s23_s18 }
  0x1b   :  { %p2043_p10 = scmp.ne.s32.totalorder %s23_s18, %s2042_s1  ;;  %p2048_p12 = scmp.lt.s32.totalorder %s2042_s1, %s2042_s1 }
  0x1d   :  { %p2049_p13 = por %p2048_p12, %p2047_p11 }
  0x1f   :  { %p2050_p0 = pnand %p2049_p13, %p2043_p10 }
  0x21   :  { %2053 = shalt.err (!%p2050_p0)
}
  0x22   :  { %28 = dma.hbm_to_vmem [thread:$0]  %s2383_s0, 256, %s23_s18, [#allocation3], %s2124_s10, %s2124_s10, %s2125_s11  }
  0x23   :  { %s2062_s4 = scalar_lea.vmem %s47_s20, 256  ;;  %p2067_p2 = scmp.lt.s32.totalorder %s47_s20, %s47_s20 }
  0x24   :  { %p2063_p1 = scmp.ne.s32.totalorder %s47_s20, %s2062_s4  ;;  %p2068_p3 = scmp.lt.s32.totalorder %s2062_s4, %s2062_s4 }
  0x26   :  { %p2069_p4 = por %p2068_p3, %p2067_p2 }
  0x28   :  { %p2070_p5 = pnand %p2069_p4, %p2063_p1 }
  0x2a   :  { %2073 = shalt.err (!%p2070_p5)
}
  0x2b   :  { %52 = dma.hbm_to_vmem [thread:$0]  %s2385_s2, 256, %s47_s20, [#allocation6], %s2124_s10, %s2124_s10, %s2125_s11  }
  0x2c   :  { %s2128_s25 = smov [#allocation10]  }
  0x2d   :  { %s74_s26 = sshll.u32 %s2128_s25, 4  ;;  %s75_s26 = int_to_ptr.vmem [resolvable:$true] %s74_s26 }
  0x2e   :  { %s2082_s27 = scalar_lea.vmem %s75_s26, 512  ;;  %p2087_p7 = scmp.lt.s32.totalorder %s75_s26, %s75_s26 }
  0x2f   :  { %p2083_p6 = scmp.ne.s32.totalorder %s75_s26, %s2082_s27  ;;  %p2088_p8 = scmp.lt.s32.totalorder %s2082_s27, %s2082_s27 }
  0x31   :  { %p2089_p9 = por %p2088_p8, %p2087_p7 }
  0x33   :  { %p2090_p10 = pnand %p2089_p9, %p2083_p6 }
  0x35   :  { %2093 = shalt.err (!%p2090_p10)
}
  0x36   :  { %80 = dma.hbm_to_vmem [thread:$0]  %s2389_s6, 512, %s75_s26, [#allocation9], %s2124_s10, %s2124_s10, %s2125_s11  }
  0x37   :  { %2114 = dma.done.wait [#allocation3], 256  }
  0x38   :  { %2115 = vsyncadd [#allocation3], 4294967040 }
  0x39   :  { %2116 = dma.done.wait [#allocation6], 512  }
  0x3a   :  { %2117 = vsyncadd [#allocation6], 4294966784 }
  0x3b   :  { %2118 = dma.done.wait [#allocation9], 768  }
  0x3c   :  { %2119 = vsyncadd [#allocation9], 4294966528  ;;  %vm111_vm0 = vcmask 130048   ;;  %v103_v0 = vld [vmem:[#allocation7 + $0x8] sm:$0xff]  ;;  %v102_v1 = vld [vmem:[#allocation7] sm:$0xff]  ;;  %v2129_v8 = vmov 0.0  }
  0x3d   :  { %v98_v2 = vld [vmem:[#allocation2] sm:$0xff]  ;;  %1838 = vmatprep.subr.mxu1 %v103_v0  ;;  %v99_v3 = vld [vmem:[#allocation2 + $0x8] sm:$0xff]  ;;  %v194_v4 = vld [vmem:[#allocation8 + $0x8] sm:$0xff]  ;;  %1852 = vmatprep.subr.mxu0 %v2129_v8  ;;  %vm2130_vm1 = vmmov 0   ;;  %vm283_vm2 = vcmask 64512   ;;  %s2131_s9 = smov 96  }
  0x3e   :  { %1842 = vmatprep.mubr.msk.f32.mxu1 %vm111_vm0, %v98_v2  ;;  %1839 = vmatpush3.msra.mxu1 %v103_v0  ;;  %v100_v5 = vld [vmem:[#allocation5] sm:$0xff]  ;;  %v101_v7 = vld [vmem:[#allocation5 + $0x8] sm:$0xff]  ;;  %v1762_v11 = vld [vmem:[%s2388_s5] ss:$0 sm:$0xff]  ;;  %s2133_s5 = smov 88   ;;  %s2134_s12 = smov 112  }
  0x3f   :  { %1840 = vmatprep.subr.mxu1 %v102_v1  ;;  %v193_v6 = vld [vmem:[#allocation8] sm:$0xff]  ;;  %1854 = vmatprep.mubr.msk.f32.mxu0 %vm2130_vm1, %v2129_v8  ;;  %v1759_v13 = vld [vmem:[%s2386_s3] ss:$0 sm:$0xff]  ;;  %s2132_s3 = smov 120   ;;  %s2135_s13 = smov 80   ;;  %vm1636_vm3 = vcmask 195584  }
  0x40   :  { %1841 = vmatpush3.msra.mxu1 %v102_v1  ;;  %s2136_s14 = smov 104   ;;  %s2137_s15 = smov 72   ;;  %vm1652_vm4 = vcmask 261120  }
  0x41   :  { %1843 = vmatmul.mubr.msk.f32.vlgmr.msra.gmra.mxu1 %vm111_vm0, %v99_v3  ;;  %1845 = vmatprep.subr.mxu1 %v194_v4  ;;  %s2138_s16 = smov 16   ;;  %s2139_s17 = smov 24  }
  0x42   :  { %1846 = vmatpush3.msra.mxu1 %v194_v4  ;;  %1849 = vmatprep.mubr.msk.f32.mxu1 %vm111_vm0, %v100_v5  ;;  %s2140_s20 = smov [#allocation11]  }
  0x43   :  { %1847 = vmatprep.subr.mxu1 %v193_v6  ;;  %s1745_s1 = sshll.u32 %s2140_s20, 4  ;;  %s1746_s1 = int_to_ptr.vmem [resolvable:$true] %s1745_s1 }
  0x44   :  { %1848 = vmatpush3.msra.mxu1 %v193_v6  ;;  %s2094_s21 = scalar_lea.vmem %s1746_s1, 256  ;;  %p2099_p12 = scmp.lt.s32.totalorder %s1746_s1, %s1746_s1 }
  0x45   :  { %1850 = vmatmul.mubr.msk.f32.vlgmr.msra.gmra.mxu1 %vm111_vm0, %v101_v7  ;;  %1857 = vmatprep.subr.mxu1 %v2129_v8  ;;  %p2095_p11 = scmp.ne.s32.totalorder %s1746_s1, %s2094_s21  ;;  %p2100_p13 = scmp.lt.s32.totalorder %s2094_s21, %s2094_s21 }
  0x46   :  { %1859 = vmatprep.mubr.msk.f32.mxu1 %vm2130_vm1, %v2129_v8 }
  0x47   :  { %p2101_p0 = por %p2100_p13, %p2099_p12 }
  0x49   :  { %p2102_p1 = pnand %p2101_p0, %p2095_p11 }
 0x101   :  { %v1844_v9 = vpop.f32.mrf.mxu1 }
 0x102   :  { %v2239_v17 = vadd.f32 %v1844_v9, %v1759_v13 }
 0x103   :  { %v184_v10 = vpop.f32.mrf.mxu1 }
 0x104   :  { %v2244_v18 = vadd.f32 %v1759_v13, %v184_v10 }
 0x105   :  { %v1851_v12 = vpop.f32.mrf.mxu1 }
 0x106   :  { %v2232_v14 = vadd.f32 %v1851_v12, %v1762_v11 }
 0x107   :  { %v274_v15 = vpop.f32.mrf.mxu1 }
 0x108   :  { %v2234_v16 = vadd.f32 %v1762_v11, %v274_v15  ;;  %536 = vrot.lane.b32.xlu1 %v2232_v14, %s2131_s9  ;;  %1858 = vmatpush3.xpose.msk.msra.mxu1 %vm283_vm2, %v2232_v14 }
 0x109   :  { %1867 = vmatprep.subr.mxu1 %v2129_v8 }
 0x10a   :  { %1853 = vmatpush3.xpose.msk.msra.mxu0 %vm283_vm2, %v2234_v16 }
 0x10b   :  { %1860 = vmatmul.mubr.msk.f32.vlgmr.msra.gmra.mxu1 %vm283_vm2, %v2239_v17  ;;  %1862 = vmatprep.subr.mxu0 %v2129_v8 }
 0x10c   :  { %614 = vrot.lane.b32.xlu1 %v2234_v16, %s2132_s3  ;;  %1869 = vmatprep.mubr.msk.f32.mxu1 %vm2130_vm1, %v2129_v8 }
 0x10d   :  { %1855 = vmatmul.mubr.msk.f32.vlgmr.msra.gmra.mxu0 %vm283_vm2, %v2244_v18 }
 0x10e   :  { %1864 = vmatprep.mubr.msk.f32.mxu0 %vm2130_vm1, %v2129_v8 }
 0x110   :  { %692 = vrot.lane.b32.xlu1 %v2232_v14, %s2132_s3 }
 0x17a   :  { %v537_v19 = vpop.permute.xlu1 %536 }
 0x17b   :  { %1868 = vmatpush3.msra.mxu1 %v537_v19 }
 0x17c   :  { %1877 = vmatprep.subr.mxu1 %v2129_v8 }
 0x17e   :  { %v615_v39 = vpop.permute.xlu1 %614 }
 0x182   :  { %v693_v40 = vpop.permute.xlu1 %692 }
 0x1cb   :  { %v432_v20 = vpop.f32.mrf.mxu1 }
 0x1cc   :  { %v437_v25 = vmul.f32 0.17677669, %v432_v20 }
 0x1cd   :  { %v356_v21 = vpop.f32.mrf.mxu0  ;;  %v1861_v22 = vpop.f32.mrf.mxu1 }
 0x1ce   :  { %v436_v23 = vmul.f32 0.17677669, %v356_v21  ;;  %v441_v27 = vsel %vm283_vm2, %v437_v25, -inf }
 0x1cf   :  { %v1856_v24 = vpop.f32.mrf.mxu0 }
 0x1d0   :  { %v438_v26 = vsel %vm283_vm2, %v436_v23, -inf }
 0x1d1   :  { %439 = vmax.xlane.f32.xlu0 %v438_v26 }
 0x1d5   :  { %442 = vmax.xlane.f32.xlu0 %v441_v27 }
 0x1eb   :  { %460 = vrot.lane.b32.xlu0 %v2234_v16, %s2131_s9 }
 0x1ef   :  { %612 = vrot.lane.b32.xlu0 %v2244_v18, %s2132_s3 }
 0x25a   :  { %v440_v28 = vpop.xlane.xlu0 %439 }
 0x25b   :  { %v444_v29 = vsub.f32 %v436_v23, %v440_v28 }
 0x25d   :  { %v446_v32 = vmul.f32 1.442695, %v444_v29 }
 0x25e   :  { %v443_v30 = vpop.xlane.xlu0 %442 }
 0x25f   :  { %v445_v31 = vsub.f32 %v437_v25, %v443_v30 }
 0x261   :  { %v448_v33 = vmul.f32 1.442695, %v445_v31 }
 0x262   :  { %v461_v34 = vpop.permute.xlu0 %460 }
 0x263   :  { %1962 = vpow2.f32 %v448_v33  ;;  %1863 = vmatpush3.msra.mxu0 %v461_v34 }
 0x264   :  { %1872 = vmatprep.subr.mxu0 %v2129_v8  ;;  %1964 = vpow2.f32 %v446_v32 }
 0x266   :  { %v613_v48 = vpop.permute.xlu0 %612 }
 0x270   :  { %v1963_v35 = vpop.eup %1962 }
 0x271   :  { %v453_v36 = vsel %vm283_vm2, %v1963_v35, 0.0  ;;  %v1965_v37 = vpop.eup %1964 }
 0x272   :  { %454 = vadd.xlane.f32.xlu1 %v453_v36  ;;  %v450_v38 = vsel %vm283_vm2, %v1965_v37, 0.0 }
 0x276   :  { %451 = vadd.xlane.f32.xlu1 %v450_v38 }
 0x287   :  { %690 = vrot.lane.b32.xlu1 %v2239_v17, %s2132_s3 }
 0x2fb   :  { %v455_v41 = vpop.xlane.xlu1 %454 }
 0x2fc   :  { %1966 = vrcp.f32 %v455_v41 }
 0x2ff   :  { %v452_v42 = vpop.xlane.xlu1 %451 }
 0x300   :  { %1968 = vrcp.f32 %v452_v42 }
 0x303   :  { %v691_v47 = vpop.permute.xlu1 %690 }
 0x309   :  { %v1967_v43 = vpop.eup %1966 }
 0x30a   :  { %v459_v44 = vmul.f32 %v1967_v43, %v1963_v35 }
 0x30c   :  { %1870 = vmatmul.mubr.msk.f32.vlgmr.msra.gmra.mxu1 %vm283_vm2, %v459_v44 }
 0x30d   :  { %v1969_v45 = vpop.eup %1968  ;;  %1878 = vmatpush3.xpose.msk.msra.mxu1 %vm283_vm2, %v693_v40  ;;  %1879 = vmatprep.mubr.msk.f32.mxu1 %vm2130_vm1, %v2129_v8 }
 0x30e   :  { %v458_v46 = vmul.f32 %v1969_v45, %v1965_v37  ;;  %1887 = vmatprep.subr.mxu1 %v2129_v8 }
 0x310   :  { %1865 = vmatmul.mubr.msk.f32.vlgmr.msra.gmra.mxu0 %vm283_vm2, %v458_v46  ;;  %1880 = vmatmul.mubr.msk.f32.vlgmr.msra.gmra.mxu1 %vm283_vm2, %v691_v47 }
 0x311   :  { %1873 = vmatpush3.xpose.msk.msra.mxu0 %vm283_vm2, %v615_v39  ;;  %1874 = vmatprep.mubr.msk.f32.mxu0 %vm2130_vm1, %v2129_v8 }
 0x312   :  { %1882 = vmatprep.subr.mxu0 %v2129_v8  ;;  %1889 = vmatprep.mubr.msk.f32.mxu1 %vm2130_vm1, %v2129_v8 }
 0x314   :  { %1875 = vmatmul.mubr.msk.f32.vlgmr.msra.gmra.mxu0 %vm283_vm2, %v613_v48 }
 0x315   :  { %1884 = vmatprep.mubr.msk.f32.mxu0 %vm2130_vm1, %v2129_v8 }
 0x3cc   :  { %v2286_v49 = vpop.f32.mrf.mxu1 }
 0x3ce   :  { %v1871_v50 = vpop.f32.mrf.mxu1 }
 0x3d0   :  { %v2288_v51 = vpop.f32.mrf.mxu0  ;;  %v764_v52 = vpop.f32.mrf.mxu1 }
 0x3d1   :  { %v769_v53 = vmul.f32 0.17677669, %v764_v52 }
 0x3d2   :  { %v1866_v54 = vpop.f32.mrf.mxu0  ;;  %v1881_v55 = vpop.f32.mrf.mxu1 }
 0x3d3   :  { %v773_v56 = vsel %vm283_vm2, %v769_v53, -inf }
 0x3d4   :  { %774 = vmax.xlane.f32.xlu1 %v773_v56  ;;  %v686_v57 = vpop.f32.mrf.mxu0 }
 0x3d5   :  { %v768_v58 = vmul.f32 0.17677669, %v686_v57 }
 0x3d6   :  { %v1876_v59 = vpop.f32.mrf.mxu0 }
 0x3d7   :  { %v770_v60 = vsel %vm283_vm2, %v768_v58, -inf }
 0x3d8   :  { %771 = vmax.xlane.f32.xlu0 %v770_v60 }
 0x3e5   :  { %868 = vrot.lane.b32.xlu1 %v2232_v14, %s2133_s5 }
 0x3e9   :  { %946 = vrot.lane.b32.xlu1 %v2234_v16, %s2134_s12 }
 0x3ed   :  { %1024 = vrot.lane.b32.xlu1 %v2232_v14, %s2134_s12 }
 0x3f1   :  { %1022 = vrot.lane.b32.xlu1 %v2239_v17, %s2134_s12 }
 0x45d   :  { %v775_v61 = vpop.xlane.xlu1 %774 }
 0x45e   :  { %v777_v62 = vsub.f32 %v769_v53, %v775_v61 }
 0x460   :  { %v780_v63 = vmul.f32 1.442695, %v777_v62 }
 0x461   :  { %v869_v0 = vpop.permute.xlu1 %868  ;;  %v772_v1 = vpop.xlane.xlu0 %771 }
 0x462   :  { %1970 = vpow2.f32 %v780_v63  ;;  %v776_v2 = vsub.f32 %v768_v58, %v772_v1  ;;  %1888 = vmatpush3.msra.mxu1 %v869_v0 }
 0x463   :  { %1897 = vmatprep.subr.mxu1 %v2129_v8 }
 0x464   :  { %v778_v3 = vmul.f32 1.442695, %v776_v2 }
 0x465   :  { %v947_v11 = vpop.permute.xlu1 %946 }
 0x466   :  { %1972 = vpow2.f32 %v778_v3 }
 0x469   :  { %v1025_v15 = vpop.permute.xlu1 %1024 }
 0x46d   :  { %v1023_v22 = vpop.permute.xlu1 %1022 }
 0x46f   :  { %v1971_v4 = vpop.eup %1970 }
 0x470   :  { %v785_v5 = vsel %vm283_vm2, %v1971_v4, 0.0 }
 0x471   :  { %786 = vadd.xlane.f32.xlu0 %v785_v5 }
 0x473   :  { %v1973_v6 = vpop.eup %1972 }
 0x474   :  { %v782_v7 = vsel %vm283_vm2, %v1973_v6, 0.0 }
 0x475   :  { %783 = vadd.xlane.f32.xlu0 %v782_v7 }
 0x48b   :  { %792 = vrot.lane.b32.xlu0 %v2234_v16, %s2133_s5 }
 0x48f   :  { %944 = vrot.lane.b32.xlu0 %v2244_v18, %s2134_s12 }
 0x4fa   :  { %v787_v9 = vpop.xlane.xlu0 %786 }
 0x4fb   :  { %1974 = vrcp.f32 %v787_v9 }
 0x4fe   :  { %v784_v10 = vpop.xlane.xlu0 %783 }
 0x4ff   :  { %1976 = vrcp.f32 %v784_v10 }
 0x502   :  { %v793_v12 = vpop.permute.xlu0 %792 }
 0x503   :  { %1883 = vmatpush3.msra.mxu0 %v793_v12 }
 0x504   :  { %1892 = vmatprep.subr.mxu0 %v2129_v8 }
 0x506   :  { %v945_v23 = vpop.permute.xlu0 %944 }
 0x508   :  { %v1975_v13 = vpop.eup %1974 }
 0x509   :  { %v791_v19 = vmul.f32 %v1975_v13, %v1971_v4 }
 0x50b   :  { %1890 = vmatmul.mubr.msk.f32.vlgmr.msra.gmra.mxu1 %vm283_vm2, %v791_v19 }
 0x50c   :  { %v1977_v20 = vpop.eup %1976  ;;  %1898 = vmatpush3.xpose.msk.msra.mxu1 %vm283_vm2, %v1025_v15  ;;  %1899 = vmatprep.mubr.msk.f32.mxu1 %vm2130_vm1, %v2129_v8 }
 0x50d   :  { %v790_v21 = vmul.f32 %v1977_v20, %v1973_v6  ;;  %1907 = vmatprep.subr.mxu1 %v2129_v8 }
 0x50f   :  { %1885 = vmatmul.mubr.msk.f32.vlgmr.msra.gmra.mxu0 %vm283_vm2, %v790_v21  ;;  %1900 = vmatmul.mubr.msk.f32.vlgmr.msra.gmra.mxu1 %vm283_vm2, %v1023_v22 }
 0x510   :  { %1893 = vmatpush3.xpose.msk.msra.mxu0 %vm283_vm2, %v947_v11  ;;  %1894 = vmatprep.mubr.msk.f32.mxu0 %vm2130_vm1, %v2129_v8 }
 0x511   :  { %1902 = vmatprep.subr.mxu0 %v2129_v8  ;;  %1909 = vmatprep.mubr.msk.f32.mxu1 %vm2130_vm1, %v2129_v8 }
 0x513   :  { %1895 = vmatmul.mubr.msk.f32.vlgmr.msra.gmra.mxu0 %vm283_vm2, %v945_v23 }
 0x514   :  { %1904 = vmatprep.mubr.msk.f32.mxu0 %vm2130_vm1, %v2129_v8 }
 0x5cb   :  { %v2318_v24 = vpop.f32.mrf.mxu1 }
 0x5cd   :  { %v1891_v25 = vpop.f32.mrf.mxu1 }
 0x5cf   :  { %v2320_v26 = vpop.f32.mrf.mxu0  ;;  %v1096_v27 = vpop.f32.mrf.mxu1 }
 0x5d0   :  { %v1101_v28 = vmul.f32 0.17677669, %v1096_v27 }
 0x5d1   :  { %v1886_v29 = vpop.f32.mrf.mxu0  ;;  %v1901_v30 = vpop.f32.mrf.mxu1 }
 0x5d2   :  { %v1105_v31 = vsel %vm283_vm2, %v1101_v28, -inf  ;;  %v1644_v29 = vld [vmem:[#allocation10 + $0x18] sm:$0xff]  ;;  %v1643_v30 = vld [vmem:[#allocation10 + $0x10] sm:$0xff] }
 0x5d3   :  { %1106 = vmax.xlane.f32.xlu1 %v1105_v31  ;;  %v1018_v32 = vpop.f32.mrf.mxu0  ;;  %v1641_v31 = vld [vmem:[#allocation10] sm:$0xff] }
 0x5d4   :  { %v1100_v33 = vmul.f32 0.17677669, %v1018_v32 }
 0x5d5   :  { %v1896_v34 = vpop.f32.mrf.mxu0 }
 0x5d6   :  { %v1102_v35 = vsel %vm283_vm2, %v1100_v33, -inf }
 0x5d7   :  { %1103 = vmax.xlane.f32.xlu0 %v1102_v35 }
 0x5e4   :  { %1200 = vrot.lane.b32.xlu1 %v2232_v14, %s2135_s13 }
 0x5e8   :  { %1278 = vrot.lane.b32.xlu1 %v2234_v16, %s2136_s14 }
 0x5ec   :  { %1356 = vrot.lane.b32.xlu1 %v2232_v14, %s2136_s14 }
 0x5f0   :  { %1354 = vrot.lane.b32.xlu1 %v2239_v17, %s2136_s14 }
 0x65c   :  { %v1107_v36 = vpop.xlane.xlu1 %1106 }
 0x65d   :  { %v1109_v37 = vsub.f32 %v1101_v28, %v1107_v36 }
 0x65f   :  { %v1112_v38 = vmul.f32 1.442695, %v1109_v37 }
 0x660   :  { %v1201_v39 = vpop.permute.xlu1 %1200  ;;  %v1104_v40 = vpop.xlane.xlu0 %1103 }
 0x661   :  { %1978 = vpow2.f32 %v1112_v38  ;;  %v1108_v41 = vsub.f32 %v1100_v33, %v1104_v40  ;;  %1908 = vmatpush3.msra.mxu1 %v1201_v39 }
 0x662   :  { %1917 = vmatprep.subr.mxu1 %v2129_v8 }
 0x663   :  { %v1110_v42 = vmul.f32 1.442695, %v1108_v41 }
 0x664   :  { %v1279_v50 = vpop.permute.xlu1 %1278 }
 0x665   :  { %1980 = vpow2.f32 %v1110_v42 }
 0x668   :  { %v1357_v54 = vpop.permute.xlu1 %1356 }
 0x66c   :  { %v1355_v58 = vpop.permute.xlu1 %1354 }
 0x66e   :  { %v1979_v43 = vpop.eup %1978 }
 0x66f   :  { %v1117_v44 = vsel %vm283_vm2, %v1979_v43, 0.0 }
 0x670   :  { %1118 = vadd.xlane.f32.xlu0 %v1117_v44 }
 0x672   :  { %v1981_v45 = vpop.eup %1980 }
 0x673   :  { %v1114_v46 = vsel %vm283_vm2, %v1981_v45, 0.0 }
 0x674   :  { %1115 = vadd.xlane.f32.xlu0 %v1114_v46 }
 0x68a   :  { %1124 = vrot.lane.b32.xlu0 %v2234_v16, %s2135_s13 }
 0x68e   :  { %1276 = vrot.lane.b32.xlu0 %v2244_v18, %s2136_s14 }
 0x6f9   :  { %v1119_v47 = vpop.xlane.xlu0 %1118 }
 0x6fa   :  { %1982 = vrcp.f32 %v1119_v47 }
 0x6fd   :  { %v1116_v48 = vpop.xlane.xlu0 %1115 }
 0x6fe   :  { %1984 = vrcp.f32 %v1116_v48 }
 0x701   :  { %v1125_v52 = vpop.permute.xlu0 %1124 }
 0x702   :  { %1903 = vmatpush3.msra.mxu0 %v1125_v52 }
 0x703   :  { %1912 = vmatprep.subr.mxu0 %v2129_v8 }
 0x705   :  { %v1277_v59 = vpop.permute.xlu0 %1276 }
 0x707   :  { %v1983_v53 = vpop.eup %1982 }
 0x708   :  { %v1123_v55 = vmul.f32 %v1983_v53, %v1979_v43 }
 0x70a   :  { %1910 = vmatmul.mubr.msk.f32.vlgmr.msra.gmra.mxu1 %vm283_vm2, %v1123_v55 }
 0x70b   :  { %v1985_v56 = vpop.eup %1984  ;;  %1918 = vmatpush3.xpose.msk.msra.mxu1 %vm283_vm2, %v1357_v54  ;;  %1919 = vmatprep.mubr.msk.f32.mxu1 %vm2130_vm1, %v2129_v8 }
 0x70c   :  { %v1122_v57 = vmul.f32 %v1985_v56, %v1981_v45  ;;  %1927 = vmatprep.subr.mxu1 %v2129_v8 }
 0x70e   :  { %1905 = vmatmul.mubr.msk.f32.vlgmr.msra.gmra.mxu0 %vm283_vm2, %v1122_v57  ;;  %1920 = vmatmul.mubr.msk.f32.vlgmr.msra.gmra.mxu1 %vm283_vm2, %v1355_v58 }
 0x70f   :  { %1913 = vmatpush3.xpose.msk.msra.mxu0 %vm283_vm2, %v1279_v50  ;;  %1914 = vmatprep.mubr.msk.f32.mxu0 %vm2130_vm1, %v2129_v8 }
 0x710   :  { %1922 = vmatprep.subr.mxu0 %v2129_v8  ;;  %1929 = vmatprep.mubr.msk.f32.mxu1 %vm2130_vm1, %v2129_v8 }
 0x712   :  { %1915 = vmatmul.mubr.msk.f32.vlgmr.msra.gmra.mxu0 %vm283_vm2, %v1277_v59 }
 0x713   :  { %1924 = vmatprep.mubr.msk.f32.mxu0 %vm2130_vm1, %v2129_v8 }
 0x7ca   :  { %v1272_v60 = vpop.f32.mrf.mxu1 }
 0x7cc   :  { %v1911_v61 = vpop.f32.mrf.mxu1 }
 0x7ce   :  { %v1196_v62 = vpop.f32.mrf.mxu0  ;;  %v1428_v63 = vpop.f32.mrf.mxu1 }
 0x7cf   :  { %v1433_v0 = vmul.f32 0.17677669, %v1428_v63 }
 0x7d0   :  { %v1906_v1 = vpop.f32.mrf.mxu0  ;;  %v1921_v2 = vpop.f32.mrf.mxu1 }
 0x7d1   :  { %v1437_v3 = vsel %vm283_vm2, %v1433_v0, -inf }
 0x7d2   :  { %1438 = vmax.xlane.f32.xlu1 %v1437_v3  ;;  %v1350_v4 = vpop.f32.mrf.mxu0 }
 0x7d3   :  { %v1432_v5 = vmul.f32 0.17677669, %v1350_v4 }
 0x7d4   :  { %v1916_v6 = vpop.f32.mrf.mxu0 }
 0x7d5   :  { %v1434_v7 = vsel %vm283_vm2, %v1432_v5, -inf }
 0x7d6   :  { %1435 = vmax.xlane.f32.xlu0 %v1434_v7 }
 0x7e3   :  { %1532 = vrot.lane.b32.xlu1 %v2232_v14, %s2137_s15 }
 0x7e7   :  { %1610 = vrot.lane.b32.xlu1 %v2320_v26, %s2125_s11 }
 0x7eb   :  { %1612 = vrot.lane.b32.xlu1 %v2318_v24, %s2125_s11 }
 0x7ef   :  { %1620 = vrot.lane.b32.xlu1 %v1272_v60, %s2138_s16 }
 0x85b   :  { %v1439_v8 = vpop.xlane.xlu1 %1438 }
 0x85c   :  { %v1441_v9 = vsub.f32 %v1433_v0, %v1439_v8 }
 0x85e   :  { %v1444_v10 = vmul.f32 1.442695, %v1441_v9 }
 0x85f   :  { %v1533_v11 = vpop.permute.xlu1 %1532  ;;  %v1436_v12 = vpop.xlane.xlu0 %1435 }
 0x860   :  { %1986 = vpow2.f32 %v1444_v10  ;;  %v1440_v13 = vsub.f32 %v1432_v5, %v1436_v12  ;;  %1928 = vmatpush3.msra.mxu1 %v1533_v11 }
 0x862   :  { %v1442_v15 = vmul.f32 1.442695, %v1440_v13 }
 0x863   :  { %v1611_v36 = vpop.permute.xlu1 %1610 }
 0x864   :  { %1988 = vpow2.f32 %v1442_v15  ;;  %v1632_v42 = vsel %vm283_vm2, %v2288_v51, %v1611_v36 }
 0x867   :  { %v1613_v37 = vpop.permute.xlu1 %1612 }
 0x868   :  { %v1633_v41 = vsel %vm283_vm2, %v2286_v49, %v1613_v37  ;;  %v1789_v49 = vld [vmem:[%s2390_s7] ss:$0 sm:$0xff] }
 0x86b   :  { %v1621_v38 = vpop.permute.xlu1 %1620 }
 0x86c   :  { %v1635_v43 = vsel %vm111_vm0, %v1633_v41, %v1621_v38 }
 0x86d   :  { %v1987_v19 = vpop.eup %1986 }
 0x86e   :  { %v1449_v14 = vsel %vm283_vm2, %v1987_v19, 0.0 }
 0x86f   :  { %1450 = vadd.xlane.f32.xlu0 %v1449_v14 }
 0x871   :  { %v1989_v20 = vpop.eup %1988 }
 0x872   :  { %v1446_v21 = vsel %vm283_vm2, %v1989_v20, 0.0 }
 0x873   :  { %1447 = vadd.xlane.f32.xlu0 %v1446_v21 }
 0x889   :  { %1456 = vrot.lane.b32.xlu0 %v2234_v16, %s2137_s15  ;;  %v1642_v16 = vld [vmem:[#allocation10 + $0x8] sm:$0xff] }
 0x88d   :  { %1618 = vrot.lane.b32.xlu0 %v1196_v62, %s2138_s16 }
 0x8f8   :  { %v1451_v22 = vpop.xlane.xlu0 %1450 }
 0x8f9   :  { %1990 = vrcp.f32 %v1451_v22 }
 0x8fc   :  { %v1448_v23 = vpop.xlane.xlu0 %1447 }
 0x8fd   :  { %1992 = vrcp.f32 %v1448_v23 }
 0x900   :  { %v1457_v24 = vpop.permute.xlu0 %1456 }
 0x901   :  { %1923 = vmatpush3.msra.mxu0 %v1457_v24 }
 0x902   :  { %1932 = vmatprep.subr.mxu0 %v1644_v29 }
 0x904   :  { %v1619_v39 = vpop.permute.xlu0 %1618 }
 0x905   :  { %v1634_v44 = vsel %vm111_vm0, %v1632_v42, %v1619_v39 }
 0x906   :  { %v1991_v25 = vpop.eup %1990 }
 0x907   :  { %v1455_v26 = vmul.f32 %v1991_v25, %v1987_v19 }
 0x909   :  { %1930 = vmatmul.mubr.msk.f32.vlgmr.msra.gmra.mxu1 %vm283_vm2, %v1455_v26 }
 0x90a   :  { %v1993_v27 = vpop.eup %1992 }
 0x90b   :  { %v1454_v28 = vmul.f32 %v1993_v27, %v1989_v20 }
 0x90d   :  { %1925 = vmatmul.mubr.msk.f32.vlgmr.msra.gmra.mxu0 %vm283_vm2, %v1454_v28 }
 0x90e   :  { %1933 = vmatpush3.msra.mxu0 %v1644_v29 }
 0x90f   :  { %1934 = vmatprep.subr.mxu0 %v1643_v30 }
 0x910   :  { %1935 = vmatpush3.msra.mxu0 %v1643_v30 }
 0x911   :  { %1936 = vmatprep.subr.mxu0 %v1642_v16 }
 0x912   :  { %1937 = vmatpush3.msra.mxu0 %v1642_v16 }
 0x913   :  { %1938 = vmatprep.subr.mxu0 %v1641_v31 }
 0x914   :  { %1939 = vmatpush3.msra.mxu0 %v1641_v31 }
 0x9c9   :  { %v1604_v32 = vpop.f32.mrf.mxu1 }
 0x9ca   :  { %1628 = vrot.lane.b32.xlu1 %v1604_v32, %s2139_s17 }
 0x9cb   :  { %v1931_v33 = vpop.f32.mrf.mxu1 }
 0x9cd   :  { %v1528_v34 = vpop.f32.mrf.mxu0 }
 0x9ce   :  { %1626 = vrot.lane.b32.xlu0 %v1528_v34, %s2139_s17 }
 0x9cf   :  { %v1926_v35 = vpop.f32.mrf.mxu0 }
 0xa3c   :  { %v1629_v40 = vpop.permute.xlu1 %1628 }
 0xa3d   :  { %v1638_v45 = vsel %vm1636_vm3, %v1635_v43, %v1629_v40 }
 0xa3e   :  { %v1640_v50 = vadd.f32 %v1638_v45, %v2239_v17 }
 0xa40   :  { %v1627_v46 = vpop.permute.xlu0 %1626 }
 0xa41   :  { %v1637_v47 = vsel %vm1636_vm3, %v1634_v44, %v1627_v46 }
 0xa42   :  { %v1639_v48 = vadd.f32 %v1637_v47, %v2244_v18 }
 0xa44   :  { %1940 = vmatprep.mubr.msk.f32.mxu0 %vm1652_vm4, %v1639_v48 }
 0xa45   :  { %1941 = vmatmul.mubr.msk.f32.vlgmr.msra.gmra.mxu0 %vm1652_vm4, %v1640_v50 }
 0xb05   :  { %v1942_v51 = vpop.f32.mrf.mxu0 }
 0xb06   :  { %v1731_v52 = vadd.f32 %v1942_v51, %v1789_v49 }
 0xb07   :  { %v1725_v53 = vpop.f32.mrf.mxu0 }
 0xb08   :  { %v1735_v54 = vmax.f32 %v1731_v52, 0.0  ;;  %v1726_v55 = vadd.f32 %v1789_v49, %v1725_v53 }
 0xb0a   :  { %v1737_v56 = vadd.f32 %v1735_v54, %v1640_v50  ;;  %v1734_v57 = vmax.f32 %v1726_v55, 0.0 }
 0xb0c   :  { %1739 = vst.msk [vmem:[#allocation11 + $0x8] sm:$0xff] %vm1652_vm4, %v1737_v56  ;;  %v1736_v17 = vadd.f32 %v1734_v57, %v1639_v48 }
 0xb0e   :  { %1738 = vst.msk [vmem:[#allocation11] sm:$0xff] %vm1652_vm4, %v1736_v17 }
 0xb0f   :  { %2105 = shalt.err (!%p2102_p1)
}
 0xb10   :  { %1751 = dma.vmem_to_hbm [thread:$0]  %s1746_s1, 256, %s2391_s8, [#allocation4], %s2124_s10, %s2124_s10, %s2125_s11  }
 0xb11   :  { %2120 = dma.done.wait [#allocation4], 256  }
 0xb12   :  { %2121 = vsyncadd [#allocation4], 4294967040 }
 0xb13   :  { %1755 = vsyncpa [#allocation3], 1 }
 0xb14   :  { %1756 = vsyncpa [#allocation6], 1 }
 0xb15   :  { %1757 = vsyncpa [#allocation9], 1 }
 0xb16   :  { %1758 = vsyncpa [#allocation4], 1 }

</bundles_post_ra>
